<compile_context>
chip_gen: v6e
topology: v6e:2x2x1
jax: 0.10.0
libtpu: 0.0.40
codegen_flags: <defaults>
</compile_context>

<pallas_src>
import functools

import jax
import jax.numpy as jnp
from jax.experimental import pallas as pl
from jax.experimental.pallas import tpu as pltpu


_BF16_AUTO_MIN_K = 64        # auto-cast f32 -> bf16 matmul inputs only for K big enough to matter
_TARGET_BLOCK_ROWS = 1024    # tile-size curves plateau near 512-1024 rows


def _round_up(x, m):
    return ((x + m - 1) // m) * m


def _vmem_budget():
    """Generation-aware (scoped_limit, sizing_budget) in bytes."""
    cap = 64 * 1024 * 1024                      # conservative fallback (v7x: 64 MiB / TC)
    try:
        cap = int(getattr(pltpu.get_tpu_info(), "vmem_capacity_bytes", cap))
    except Exception:
        pass
    if cap <= 64 * 1024 * 1024:                 # v7x: leave headroom for Mosaic scratch
        return 48 * 1024 * 1024, 40 * 1024 * 1024
    return 96 * 1024 * 1024, 88 * 1024 * 1024   # v5e / v6e: 128 MiB physical VMEM


def _fm_kernel(x_ref, w_ref, wsq_ref, b_ref, o_ref, *, act_fn):
    x = x_ref[...]                                   # (tr, K) row tile
    if x.dtype == jnp.float32:
        xsq = x * x
    else:
        # Square in f32 (the 0.5*(s1^2 - s2) difference is cancellation-prone),
        # then cast back so the MXU still sees bf16 inputs.
        xsq = (x.astype(jnp.float32) ** 2).astype(x.dtype)
    s1 = jnp.dot(x, w_ref[...], preferred_element_type=jnp.float32)
    s2 = jnp.dot(xsq, wsq_ref[...], preferred_element_type=jnp.float32)
    out = s1 + b_ref[...] + 0.5 * (s1 * s1 - s2)     # epilogue entirely in f32
    if act_fn == 'tanh':
        out = jnp.tanh(out)
    elif act_fn == 'relu':
        out = jnp.maximum(out, 0.0)
    o_ref[...] = out.astype(o_ref.dtype)


def factorized_feature_embedding(features, feature_embeddings, bias, *,
                                 act_fn='tanh', matmul_dtype='auto',
                                 out_dtype=None,
                                 target_block_rows=_TARGET_BLOCK_ROWS,
                                 core_parallel=False):
    """features: (B, S, F); feature_embeddings: (F, E); bias: (1, E) -> (B, S, E)."""
    B, S, F = features.shape
    Fw, E = feature_embeddings.shape
    assert F == Fw
    assert bias.shape == (1, E)
    M = B * S
    out_dtype = features.dtype if out_dtype is None else jnp.dtype(out_dtype)

    # ---- matmul input dtype (f32 accumulation / epilogue always) ------------
    if matmul_dtype == 'auto':
        mm_dtype = (jnp.bfloat16
                    if (features.dtype == jnp.float32 and F >= _BF16_AUTO_MIN_K)
                    else features.dtype)
    else:
        mm_dtype = features.dtype if matmul_dtype is None else jnp.dtype(matmul_dtype)
    ix = jnp.dtype(mm_dtype).itemsize
    io = jnp.dtype(out_dtype).itemsize

    x2d = features.reshape(M, F).astype(mm_dtype)
    w_f32 = feature_embeddings.astype(jnp.float32)
    w = w_f32.astype(mm_dtype)
    wsq = (w_f32 * w_f32).astype(mm_dtype)      # W^2 computed once, squared in f32
    b = bias.astype(jnp.float32)

    # ---- lane-dense output packing for narrow E ------------------------------
    k = 1
    if E < 128 and 128 % E == 0:
        kk = 128 // E
        blockdiag_bytes = 2 * 2 * (kk * F) * (kk * E) * ix   # W + W^2, double-buffered
        if M % kk == 0 and blockdiag_bytes <= 8 * 1024 * 1024:
            k = kk
    if k > 1:
        eye = jnp.eye(k, dtype=mm_dtype)
        x_in = x2d.reshape(M // k, k * F)        # free HBM reshape (row-major)
        w_in = jnp.kron(eye, w)                  # block-diagonal (k*F, k*E)
        wsq_in = jnp.kron(eye, wsq)
        b_in = jnp.tile(b, (1, k))
    else:
        x_in, w_in, wsq_in, b_in = x2d, w, wsq, b
    R, K = x_in.shape                            # rows / contraction dim fed to the kernel
    N = w_in.shape[1]                            # output lanes (k*E)

    vmem_limit, vmem_budget = _vmem_budget()

    # ---- optional E tiling: keep only a slice of W/W^2 resident when huge ----
    te = N
    if k == 1 and N > 128 and N % 128 == 0:
        def _const_bytes(t):                     # W + W^2 + bias slice, double-buffered
            return 2 * (2 * K * t * ix + t * 4)
        if _const_bytes(N) > vmem_budget // 2:
            te = 128
            while (te * 2 <= N and N % (te * 2) == 0
                   and _const_bytes(te * 2) <= vmem_budget // 2):
                te *= 2
    const_bytes = 2 * (2 * K * te * ix + te * 4)

    # ---- row-tile size: as large as fits, MXU-friendly granule ---------------
    min_rows = 16 if ix < 4 else 8               # bf16 X blocks need >= (16,128) tiles
    # double-buffered X / out tiles + (single) f32 intermediates per row
    row_bytes = 2 * (K * ix + te * io) + (K * 4 + 4 * te * 4)
    tr = max((vmem_budget - const_bytes) // row_bytes, min_rows)
    tr = min(tr, target_block_rows, _round_up(R, min_rows))
    for g in (256, 128, 64, 32, 16, 8):
        if g < min_rows:
            break
        if tr >= g:
            tr = (tr // g) * g
            break
    tr = max(tr, min_rows)

    # No padding of the row dim: the last block overhangs and Pallas masks its
    # output writeback; overhanging input reads only feed masked-out rows.
    grid = (N // te, pl.cdiv(R, tr))             # (E slices, row tiles)

    # v7x only: "parallel" alone does not split the grid across the two
    # TensorCores; CORE_PARALLEL on the row axis does (opt-in, see TODO above).
    row_sem = pltpu.CORE_PARALLEL if core_parallel else "parallel"

    cost = pl.CostEstimate(
        flops=int(4 * R * K * N + 8 * M * E),
        transcendentals=int(M * E if act_fn == 'tanh' else 0),
        bytes_accessed=int(R * K * ix + 2 * K * N * ix + N * 4 + R * N * io),
    )

    out2d = pl.pallas_call(
        functools.partial(_fm_kernel, act_fn=act_fn),
        out_shape=jax.ShapeDtypeStruct((R, N), out_dtype),
        grid_spec=pltpu.PrefetchScalarGridSpec(
            num_scalar_prefetch=0,
            grid=grid,
            in_specs=[
                pl.BlockSpec((tr, K), lambda e, m: (m, 0)),   # streamed X row tile
                pl.BlockSpec((K, te), lambda e, m: (0, e)),   # W slice (resident per e)
                pl.BlockSpec((K, te), lambda e, m: (0, e)),   # W^2 slice
                pl.BlockSpec((1, te), lambda e, m: (0, e)),   # bias slice
            ],
            out_specs=pl.BlockSpec((tr, te), lambda e, m: (m, e)),
        ),
        compiler_params=pltpu.CompilerParams(
            dimension_semantics=("parallel", row_sem),
            vmem_limit_bytes=vmem_limit,
        ),
        cost_estimate=cost,
    )(x_in, w_in, wsq_in, b_in)

    # Free: (R, N) and (B, S, E) share the same row-major flat order (also when packed).
    return out2d.reshape(B, S, E)


def _reference(features, feature_embeddings, bias, act_fn='tanh'):
    # Pure-JAX reference mirroring the PyTorch forward literally.
    fe_mul = features[..., None] * feature_embeddings           # (B,S,F,E)
    s = fe_mul.sum(axis=2)                                      # (B,S,E)
    out = s + bias + 0.5 * (s ** 2 - (fe_mul ** 2).sum(axis=2))
    if act_fn == 'tanh':
        return jnp.tanh(out)
    if act_fn == 'relu':
        return jnp.maximum(out, 0.0)
    return out


def _coarse(key, shape, scale=1.0):
    # Inputs snapped to a coarse power-of-two grid so every product / square in
    # the kernel is exactly representable even under bf16 matmul inputs or a
    # reduced-precision default f32 matmul -> the checks below stay tight
    # irrespective of the backend's matmul precision policy.
    v = jnp.round(jax.random.normal(key, shape) * 4.0) / 4.0
    return jnp.clip(v, -2.0, 2.0).astype(jnp.float32) * scale


if __name__ == "__main__":
    key = jax.random.PRNGKey(0)
    k1, k2, k3, k4, k5, k6, k7 = jax.random.split(key, 7)

    # --- small shapes consistent with the module: B=2, S=8, F=4, E=32 ---------
    # (E=32 < 128 and M=16 divisible by 4 -> lane-packed output path, k=4)
    B, S, F, E = 2, 8, 4, 32
    features = _coarse(k1, (B, S, F))
    w = _coarse(k2, (F, E))
    bias = _coarse(k3, (1, E), scale=0.25)

    out = jax.block_until_ready(factorized_feature_embedding(features, w, bias))
    ref = _reference(features, w, bias)
    assert out.shape == (B, S, E)
    assert jnp.allclose(out, ref, atol=1e-4, rtol=1e-4), "mismatch (tanh, lane-packed path)"

    # --- non-divisible row count (15 rows -> overhanging masked last block) ---
    features2 = _coarse(k4, (3, 5, F))
    out2 = jax.block_until_ready(
        factorized_feature_embedding(features2, w, bias, act_fn='relu'))
    ref2 = _reference(features2, w, bias, act_fn='relu')
    assert out2.shape == (3, 5, E)
    assert jnp.allclose(out2, ref2, atol=1e-5, rtol=1e-5), "mismatch (relu, masked fallback)"

    # --- larger contraction: MXU path with the default auto-bf16 inputs -------
    F3, E3 = 128, 256
    features3 = _coarse(k5, (2, 8, F3))
    w3 = _coarse(k6, (F3, E3), scale=0.125)
    bias3 = _coarse(k7, (1, E3), scale=0.25)
    out3 = jax.block_until_ready(factorized_feature_embedding(features3, w3, bias3))
    ref3 = _reference(features3, w3, bias3)
    assert out3.shape == (2, 8, E3)
    assert jnp.allclose(out3, ref3, atol=1e-4, rtol=1e-4), "mismatch (bf16 MXU path)"

    # --- same shape, explicit f32 matmul inputs (opt-out of bf16) -------------
    out4 = jax.block_until_ready(
        factorized_feature_embedding(features3, w3, bias3, matmul_dtype=None))
    assert jnp.allclose(out4, ref3, atol=1e-4, rtol=1e-4), "mismatch (f32 MXU path)"

    print("KERNEL_OK")
</pallas_src>

<mosaic_0001>
module attributes {stable_mosaic.version = 11 : i64} {
  func.func @_fm_kernel(%arg0: i32, %arg1: i32, %arg2: memref<8x16xf32, #tpu.memory_space<vmem>>, %arg3: memref<16x128xf32, #tpu.memory_space<vmem>>, %arg4: memref<16x128xf32, #tpu.memory_space<vmem>>, %arg5: memref<1x128xf32, #tpu.memory_space<vmem>>, %arg6: memref<8x128xf32, #tpu.memory_space<vmem>>) attributes {dimension_semantics = [#tpu.dimension_semantics<parallel>, #tpu.dimension_semantics<parallel>], iteration_bounds = array<i64: 1, 1>, scalar_prefetch = 0 : i64, scratch_operands = 0 : i64, tpu.core_type = #tpu.core_type<tc>, window_params = [{transform_indices = @transform_0, window_bounds = array<i64: 8, 16>}, {transform_indices = @transform_1, window_bounds = array<i64: 16, 128>}, {transform_indices = @transform_2, window_bounds = array<i64: 16, 128>}, {transform_indices = @transform_3, window_bounds = array<i64: 1, 128>}, {transform_indices = @transform_4, window_bounds = array<i64: 8, 128>}]} {
    %c0 = arith.constant 0 : index
    %c0_0 = arith.constant 0 : index
    %0 = vector.load %arg2[%c0, %c0_0] : memref<8x16xf32, #tpu.memory_space<vmem>>, vector<8x16xf32>
    %1 = arith.mulf %0, %0 : vector<8x16xf32>
    %c0_1 = arith.constant 0 : index
    %c0_2 = arith.constant 0 : index
    %2 = vector.load %arg3[%c0_1, %c0_2] : memref<16x128xf32, #tpu.memory_space<vmem>>, vector<16x128xf32>
    %cst = arith.constant dense<0.000000e+00> : vector<8x128xf32>
    %3 = tpu.matmul %0, %2, %cst {dimension_numbers = #tpu.dot_dimension_numbers<[1], [0], [0], [1], [0, 0, 1, 1], [], []>} : vector<8x16xf32>, vector<16x128xf32>, vector<8x128xf32> -> vector<8x128xf32>
    %c0_3 = arith.constant 0 : index
    %c0_4 = arith.constant 0 : index
    %4 = vector.load %arg4[%c0_3, %c0_4] : memref<16x128xf32, #tpu.memory_space<vmem>>, vector<16x128xf32>
    %cst_5 = arith.constant dense<0.000000e+00> : vector<8x128xf32>
    %5 = tpu.matmul %1, %4, %cst_5 {dimension_numbers = #tpu.dot_dimension_numbers<[1], [0], [0], [1], [0, 0, 1, 1], [], []>} : vector<8x16xf32>, vector<16x128xf32>, vector<8x128xf32> -> vector<8x128xf32>
    %c0_6 = arith.constant 0 : index
    %c0_7 = arith.constant 0 : index
    %6 = vector.load %arg5[%c0_6, %c0_7] : memref<1x128xf32, #tpu.memory_space<vmem>>, vector<1x128xf32>
    %7 = vector.broadcast %6 : vector<1x128xf32> to vector<8x128xf32>
    %8 = arith.addf %3, %7 : vector<8x128xf32>
    %9 = arith.mulf %3, %3 : vector<8x128xf32>
    %10 = arith.subf %9, %5 : vector<8x128xf32>
    %cst_8 = arith.constant 5.000000e-01 : f32
    %11 = vector.broadcast %cst_8 : f32 to vector<8x128xf32>
    %12 = arith.mulf %11, %10 : vector<8x128xf32>
    %13 = arith.addf %8, %12 : vector<8x128xf32>
    %14 = math.tanh %13 : vector<8x128xf32>
    %c0_9 = arith.constant 0 : index
    %c0_10 = arith.constant 0 : index
    %15 = vector.load %arg6[%c0_9, %c0_10] : memref<8x128xf32, #tpu.memory_space<vmem>>, vector<8x128xf32>
    tpu.vector_store %arg6[%c0_9, %c0_10], %14 {strides = array<i32>} : memref<8x128xf32, #tpu.memory_space<vmem>>, vector<8x128xf32>,
    return
  }
  func.func @transform_0(%arg0: i32, %arg1: i32) -> (i32, i32) {
    %c0_i32 = arith.constant 0 : i32
    %c0_i32_0 = arith.constant 0 : i32
    return %arg1, %c0_i32 : i32, i32
  }
  func.func @transform_1(%arg0: i32, %arg1: i32) -> (i32, i32) {
    %c0_i32 = arith.constant 0 : i32
    %c0_i32_0 = arith.constant 0 : i32
    return %c0_i32, %arg0 : i32, i32
  }
  func.func @transform_2(%arg0: i32, %arg1: i32) -> (i32, i32) {
    %c0_i32 = arith.constant 0 : i32
    %c0_i32_0 = arith.constant 0 : i32
    return %c0_i32, %arg0 : i32, i32
  }
  func.func @transform_3(%arg0: i32, %arg1: i32) -> (i32, i32) {
    %c0_i32 = arith.constant 0 : i32
    %c0_i32_0 = arith.constant 0 : i32
    return %c0_i32, %arg0 : i32, i32
  }
  func.func @transform_4(%arg0: i32, %arg1: i32) -> (i32, i32) {
    %c0_i32 = arith.constant 0 : i32
    return %arg1, %arg0 : i32, i32
  }
}

</mosaic_0001>

<bundles_post_ra>
// kernel: tpu_custom_call.1
= control target key start
LH: loop header
LB: loop body
LE: loop exit
PB: predicated region body
PF: predicated region fallthrough
CT: control target
= control target key end

     0   :  { %9 = vsyncpa [#allocation3], 0  ;;  %s427_s0 = inlined_call_operand.hbm [shape: f32[4,16], index: 0, kind: input, shape index: {}]   ;;  %s428_s1 = inlined_call_operand.hbm [shape: f32[16,128], index: 1, kind: input, shape index: {}]   ;;  %s429_s2 = inlined_call_operand.hbm [shape: f32[16,128], index: 2, kind: input, shape index: {}]   ;;  %s430_s3 = inlined_call_operand.vmem [shape: f32[1,128], index: 3, kind: input, shape index: {}]   ;;  %s431_s4 = inlined_call_operand.hbm [shape: f32[4,128], index: 4, kind: output, shape index: {}]  }
   0x1   :  { %10 = vsyncpa [#allocation6], 0 }
   0x2   :  { %11 = vsyncpa [#allocation4], 0 }
   0x3   :  { %16 = vsyncadd [#allocation3], 64  ;;  %s365_s15 = smov [#allocation5]  }
   0x4   :  { %s29_s16 = sshll.u32 %s365_s15, 4  ;;  %s30_s16 = int_to_ptr.vmem [resolvable:$true] %s29_s16 }
   0x5   :  { %s287_s17 = scalar_lea.vmem %s30_s16, 256  ;;  %p292_p1 = scmp.lt.s32.totalorder %s30_s16, %s30_s16 }
   0x6   :  { %p288_p0 = scmp.ne.s32.totalorder %s30_s16, %s287_s17  ;;  %p293_p2 = scmp.lt.s32.totalorder %s287_s17, %s287_s17 }
   0x8   :  { %p294_p3 = por %p293_p2, %p292_p1 }
   0xa   :  { %p295_p4 = pnand %p294_p3, %p288_p0 }
   0xc   :  { %298 = shalt.err (!%p295_p4)
}
   0xd   :  { %s366_s18 = smov 128   ;;  %s367_s19 = smov 8  }
   0xe   :  { %35 = dma.hbm_to_vmem [thread:$0]  %s428_s1, 256, %s30_s16, [#allocation6], %s366_s18, %s366_s18, %s367_s19  }
   0xf   :  { %s368_s22 = smov [#allocation2]  }
  0x10   :  { %s17_s23 = sshll.u32 %s368_s22, 4  ;;  %s18_s23 = int_to_ptr.vmem [resolvable:$true] %s17_s23 }
  0x11   :  { %s307_s24 = scalar_lea.vmem %s18_s23, 64  ;;  %s311_s25 = scalar_lea.vmem %s18_s23, 128 }
  0x12   :  { %p308_p5 = scmp.ne.s32.totalorder %s18_s23, %s307_s24  ;;  %p312_p6 = scmp.lt.s32.totalorder %s18_s23, %s18_s23 }
  0x13   :  { %p313_p7 = scmp.lt.s32.totalorder %s311_s25, %s307_s24 }
  0x15   :  { %p314_p8 = por %p313_p7, %p312_p6 }
  0x17   :  { %p315_p9 = pnand %p314_p8, %p308_p5 }
  0x19   :  { %318 = shalt.err (!%p315_p9)
}
  0x1a   :  { %s369_s26 = smov 64   ;;  %s370_s27 = smov 4  }
  0x1b   :  { %23 = dma.hbm_to_vmem [thread:$0]  %s427_s0, 64, %s18_s23, [#allocation3], %s369_s26, %s369_s26, %s370_s27  }
  0x1c   :  { %s371_s1 = smov [#allocation7]  }
  0x1d   :  { %s41_s30 = sshll.u32 %s371_s1, 4  ;;  %s42_s30 = int_to_ptr.vmem [resolvable:$true] %s41_s30 }
  0x1e   :  { %s327_s5 = scalar_lea.vmem %s42_s30, 256  ;;  %p332_p11 = scmp.lt.s32.totalorder %s42_s30, %s42_s30 }
  0x1f   :  { %p328_p10 = scmp.ne.s32.totalorder %s42_s30, %s327_s5  ;;  %p333_p12 = scmp.lt.s32.totalorder %s327_s5, %s327_s5 }
  0x21   :  { %p334_p13 = por %p333_p12, %p332_p11 }
  0x23   :  { %p335_p0 = pnand %p334_p13, %p328_p10 }
  0x25   :  { %338 = shalt.err (!%p335_p0)
}
  0x26   :  { %47 = dma.hbm_to_vmem [thread:$0]  %s429_s2, 256, %s42_s30, [#allocation6], %s366_s18, %s366_s18, %s367_s19  }
  0x27   :  { %359 = dma.done.wait [#allocation3], 128  }
  0x28   :  { %360 = vsyncadd [#allocation3], 4294967168 }
  0x29   :  { %361 = dma.done.wait [#allocation6], 512  }
  0x2a   :  { %362 = vsyncadd [#allocation6], 4294966784  ;;  %v372_v0 = vmov 0.0   ;;  %vm373_vm0 = vmmov 0   ;;  %v62_v1 = vld [vmem:[#allocation5 + $0x8] sm:$0xff]  ;;  %v138_v2 = vld [vmem:[#allocation7 + $0x8] sm:$0xff] }
  0x2b   :  { %253 = vmatprep.subr.mxu0 %v372_v0  ;;  %260 = vmatprep.subr.mxu1 %v372_v0  ;;  %v61_v3 = vld [vmem:[#allocation5] sm:$0xff]  ;;  %v137_v4 = vld [vmem:[#allocation7] sm:$0xff]  ;;  %v59_v5 = vld [vmem:[#allocation2] sm:$0xff]  ;;  %vm63_vm1 = vcmask 130048  }
  0x2c   :  { %257 = vmatprep.mubr.msk.f32.mxu0 %vm373_vm0, %v372_v0  ;;  %264 = vmatprep.mubr.msk.f32.mxu1 %vm373_vm0, %v372_v0  ;;  %v60_v6 = vmul.f32 %v59_v5, %v59_v5  ;;  %v246_v10 = vld [vmem:[%s430_s3] ss:$0 sm:$0xff] }
  0x2d   :  { %254 = vmatpush3.msra.mxu0 %v62_v1  ;;  %261 = vmatpush3.msra.mxu1 %v138_v2 }
  0x2e   :  { %255 = vmatprep.subr.mxu0 %v372_v0  ;;  %262 = vmatprep.subr.mxu1 %v372_v0 }
  0x2f   :  { %256 = vmatpush3.msra.mxu0 %v61_v3  ;;  %263 = vmatpush3.msra.mxu1 %v137_v4 }
  0x30   :  { %258 = vmatmul.mubr.msk.f32.vlgmr.msra.gmra.mxu0 %vm63_vm1, %v59_v5  ;;  %265 = vmatmul.mubr.msk.f32.vlgmr.msra.gmra.mxu1 %vm63_vm1, %v60_v6 }
  0xf0   :  { %v133_v7 = vpop.f32.mrf.mxu0  ;;  %v208_v8 = vpop.f32.mrf.mxu1 }
  0xf1   :  { %v220_v9 = vmul.f32 %v133_v7, %v133_v7  ;;  %v219_v14 = vadd.f32 %v246_v10, %v133_v7 }
  0xf2   :  { %v259_v11 = vpop.f32.mrf.mxu0  ;;  %v266_v12 = vpop.f32.mrf.mxu1 }
  0xf3   :  { %v221_v13 = vsub.f32 %v220_v9, %v208_v8 }
  0xf5   :  { %v222_v15 = vmul.f32 0.5, %v221_v13 }
  0xf7   :  { %v223_v16 = vadd.f32 %v222_v15, %v219_v14 }
  0xf9   :  { %277 = vtanh.f32 %v223_v16 }
 0x106   :  { %v278_v17 = vpop.eup %277 }
 0x107   :  { %225 = vst [vmem:[#allocation8] sm:$0xff] %v278_v17 }
 0x108   :  { %230 = vsyncadd [#allocation4], 64  ;;  %s374_s8 = smov [#allocation8]  }
 0x109   :  { %s231_s9 = sshll.u32 %s374_s8, 4  ;;  %s232_s9 = int_to_ptr.vmem [resolvable:$true] %s231_s9 }
 0x10a   :  { %s339_s10 = scalar_lea.vmem %s232_s9, 64  ;;  %s343_s11 = scalar_lea.vmem %s232_s9, 128 }
 0x10b   :  { %p340_p1 = scmp.ne.s32.totalorder %s232_s9, %s339_s10  ;;  %p344_p2 = scmp.lt.s32.totalorder %s232_s9, %s232_s9 }
 0x10c   :  { %p345_p3 = scmp.lt.s32.totalorder %s343_s11, %s339_s10 }
 0x10e   :  { %p346_p4 = por %p345_p3, %p344_p2 }
 0x110   :  { %p347_p5 = pnand %p346_p4, %p340_p1 }
 0x112   :  { %350 = shalt.err (!%p347_p5)
}
 0x113   :  { %237 = dma.vmem_to_hbm [thread:$0]  %s232_s9, 64, %s431_s4, [#allocation4], %s369_s26, %s369_s26, %s370_s27  }
 0x114   :  { %363 = dma.done.wait [#allocation4], 128  }
 0x115   :  { %364 = vsyncadd [#allocation4], 4294967168 }
 0x116   :  { %241 = vsyncpa [#allocation3], 1 }
 0x117   :  { %242 = vsyncpa [#allocation6], 1 }
 0x118   :  { %243 = vsyncpa [#allocation4], 1 }

</bundles_post_ra>
